<compile_context>
chip_gen: v7x
topology: tpu7x:2x2x1
jax: 0.10.0
libtpu: 0.0.40
codegen_flags: <defaults>
</compile_context>

<pallas_src>
import jax
import jax.numpy as jnp
from jax.experimental import pallas as pl
from jax.experimental.pallas import tpu as pltpu


def attn_weights_kernel(enc_ref, q_ref, we_t_ref, wq_t_ref, wo_ref, out_ref):
    # enc_ref : (TB, T, E)   block of encoder sequences
    # q_ref   : (TB, D)      block of queries
    # we_t_ref: (E, A)       W_enc^T   (resident across the grid)
    # wq_t_ref: (D, A)       W_query^T (resident across the grid)
    # wo_ref  : (1, A)       W_out     (resident across the grid)
    # out_ref : (TB, T)      attention weights for this block
    TB, T, E = enc_ref.shape
    A = we_t_ref.shape[1]

    # One big MXU matmul over all TB*T encoder rows of this block.
    enc2d = enc_ref[...].reshape(TB * T, E)               # free relayout (T % 8 == 0)
    enc_part = jnp.dot(enc2d, we_t_ref[...],
                       preferred_element_type=jnp.float32).reshape(TB, T, A)

    # Query projection for the whole block in a single matmul.
    q_part = jnp.dot(q_ref[...], wq_t_ref[...],
                     preferred_element_type=jnp.float32)  # [TB, A]

    part = jnp.tanh(enc_part + q_part[:, None, :])        # [TB, T, A]

    # logits[b, t] = sum_a wo[a] * part[b, t, a]  ->  [TB, T]  (T on lanes).
    wo = wo_ref[...].astype(jnp.float32).reshape(1, 1, A)
    logits = jnp.sum(part * wo, axis=-1)                  # [TB, T]

    # Softmax over time (last dim).
    m = jnp.max(logits, axis=-1, keepdims=True)
    e = jnp.exp(logits - m)
    s = jnp.sum(e, axis=-1, keepdims=True)
    inv = pl.reciprocal(s, approx=True)                   # EUP slot, ~free
    inv = inv * (2.0 - s * inv)                           # one Newton step -> f32-accurate
    out_ref[...] = (e * inv).astype(out_ref.dtype)


def attention_weights_pallas(encoder_sequence, query, w_enc, w_query, w_out,
                             *, target_rows=512):
    """encoder_sequence: [B, T, E], query: [B, D],
       w_enc: [A, E], w_query: [A, D], w_out: [1, A]  (PyTorch nn.Linear weight shapes).
       Returns attention weights of shape [B, T]."""
    B, T, E = encoder_sequence.shape
    D = query.shape[-1]
    A = w_enc.shape[0]

    # Choose the batch tile TB: aim for >= ~target_rows flattened (TB*T) MXU rows per
    # block, capped by a ~4 MiB enc tile so double-buffering fits scoped VMEM
    # comfortably on v5e/v6e (128 MiB) and v7x (64 MiB).
    itemsize = jnp.dtype(encoder_sequence.dtype).itemsize
    vmem_rows = max(1, (4 << 20) // max(1, T * E * itemsize))
    tb = max(1, min(B, pl.cdiv(target_rows, T), vmem_rows))
    if tb < B:
        tb = ((tb + 7) // 8) * 8          # keep (TB, D)/(TB, T) sublane dims 8-aligned
        if tb >= B:
            tb = B
    b_pad = pl.cdiv(B, tb) * tb

    enc = encoder_sequence
    q = query
    if b_pad != B:                         # zero-pad batch; padded rows sliced off below
        enc = jnp.pad(enc, ((0, b_pad - B), (0, 0), (0, 0)))
        q = jnp.pad(q, ((0, b_pad - B), (0, 0)))

    we_t = w_enc.T                         # [E, A]
    wq_t = w_query.T                       # [D, A]

    out = pl.pallas_call(
        attn_weights_kernel,
        out_shape=jax.ShapeDtypeStruct((b_pad, T), encoder_sequence.dtype),
        grid=(b_pad // tb,),
        in_specs=[
            pl.BlockSpec((tb, T, E), lambda b: (b, 0, 0)),
            pl.BlockSpec((tb, D), lambda b: (b, 0)),
            pl.BlockSpec((E, A), lambda b: (0, 0)),
            pl.BlockSpec((D, A), lambda b: (0, 0)),
            pl.BlockSpec((1, A), lambda b: (0, 0)),
        ],
        out_specs=pl.BlockSpec((tb, T), lambda b: (b, 0)),
        compiler_params=pltpu.CompilerParams(
            dimension_semantics=("parallel",)),  # megacore sharding over batch blocks
    )(enc, q, we_t, wq_t, w_out)

    return out[:B]                         # [B, T]


def attention_weights_ref(encoder_sequence, query, w_enc, w_query, w_out):
    """Pure-JAX reference matching the PyTorch module."""
    q_part = query @ w_query.T                                   # [B, A]
    enc_part = encoder_sequence @ w_enc.T                        # [B, T, A]
    part = jnp.tanh(enc_part + q_part[:, None, :])               # [B, T, A]
    logits = (part @ w_out.T)[..., 0]                            # [B, T]
    return jax.nn.softmax(logits, axis=1)


if __name__ == "__main__":
    E, D, A = 32, 16, 32          # size_enc_hidden, size_dec_hidden, size_att_hidden

    key = jax.random.PRNGKey(0)
    k_enc, k_q, k_we, k_wq, k_wo, k_enc2, k_q2 = jax.random.split(key, 7)

    # Deterministic parameter init (PyTorch nn.Linear-style uniform bounds).
    w_enc = jax.random.uniform(k_we, (A, E), jnp.float32,
                               minval=-1.0 / E ** 0.5, maxval=1.0 / E ** 0.5)
    w_query = jax.random.uniform(k_wq, (A, D), jnp.float32,
                                 minval=-1.0 / D ** 0.5, maxval=1.0 / D ** 0.5)
    w_out = jax.random.uniform(k_wo, (1, A), jnp.float32,
                               minval=-1.0 / A ** 0.5, maxval=1.0 / A ** 0.5)

    # Case 1: small module-consistent shapes (single block, grid = 1).
    B, T = 2, 8
    enc = jax.random.normal(k_enc, (B, T, E), dtype=jnp.float32)
    qry = jax.random.normal(k_q, (B, D), dtype=jnp.float32)
    out = jax.block_until_ready(
        attention_weights_pallas(enc, qry, w_enc, w_query, w_out))
    ref = attention_weights_ref(enc, qry, w_enc, w_query, w_out)
    assert out.shape == (B, T)
    assert jnp.allclose(out, ref, atol=2e-5, rtol=2e-5), "case 1: mismatch vs reference"

    # Case 2: larger batch exercising the multi-block grid + batch padding path.
    B2, T2 = 80, 8
    enc2 = jax.random.normal(k_enc2, (B2, T2, E), dtype=jnp.float32)
    qry2 = jax.random.normal(k_q2, (B2, D), dtype=jnp.float32)
    out2 = jax.block_until_ready(
        attention_weights_pallas(enc2, qry2, w_enc, w_query, w_out))
    ref2 = attention_weights_ref(enc2, qry2, w_enc, w_query, w_out)
    assert out2.shape == (B2, T2)
    assert jnp.allclose(out2, ref2, atol=2e-5, rtol=2e-5), "case 2: mismatch vs reference"

    print("KERNEL_OK")
</pallas_src>

<mosaic_0001>
module attributes {stable_mosaic.version = 11 : i64} {
  func.func @attn_weights_kernel(%arg0: i32, %arg1: memref<2x8x32xf32, #tpu.memory_space<vmem>>, %arg2: memref<2x16xf32, #tpu.memory_space<vmem>>, %arg3: memref<32x32xf32, #tpu.memory_space<vmem>>, %arg4: memref<16x32xf32, #tpu.memory_space<vmem>>, %arg5: memref<1x32xf32, #tpu.memory_space<vmem>>, %arg6: memref<2x8xf32, #tpu.memory_space<vmem>>) attributes {dimension_semantics = [#tpu.dimension_semantics<parallel>], iteration_bounds = array<i64: 1>, scalar_prefetch = 0 : i64, scratch_operands = 0 : i64, tpu.core_type = #tpu.core_type<tc>, window_params = [{transform_indices = @transform_0, window_bounds = array<i64: 2, 8, 32>}, {transform_indices = @transform_1, window_bounds = array<i64: 2, 16>}, {pipeline_mode = #tpu.pipeline_mode<synchronous>, transform_indices = @transform_2, window_bounds = array<i64: 32, 32>}, {pipeline_mode = #tpu.pipeline_mode<synchronous>, transform_indices = @transform_3, window_bounds = array<i64: 16, 32>}, {pipeline_mode = #tpu.pipeline_mode<synchronous>, transform_indices = @transform_4, window_bounds = array<i64: 1, 32>}, {transform_indices = @transform_5, window_bounds = array<i64: 2, 8>}]} {
    %c0 = arith.constant 0 : index
    %c0_0 = arith.constant 0 : index
    %c0_1 = arith.constant 0 : index
    %0 = vector.load %arg1[%c0, %c0_0, %c0_1] : memref<2x8x32xf32, #tpu.memory_space<vmem>>, vector<2x8x32xf32>
    %1 = vector.shape_cast %0 : vector<2x8x32xf32> to vector<16x32xf32>
    %c0_2 = arith.constant 0 : index
    %c0_3 = arith.constant 0 : index
    %2 = vector.load %arg3[%c0_2, %c0_3] : memref<32x32xf32, #tpu.memory_space<vmem>>, vector<32x32xf32>
    %cst = arith.constant dense<0.000000e+00> : vector<16x32xf32>
    %3 = tpu.matmul %1, %2, %cst {dimension_numbers = #tpu.dot_dimension_numbers<[1], [0], [0], [1], [0, 0, 1, 1], [], []>} : vector<16x32xf32>, vector<32x32xf32>, vector<16x32xf32> -> vector<16x32xf32>
    %4 = vector.shape_cast %3 : vector<16x32xf32> to vector<2x8x32xf32>
    %c0_4 = arith.constant 0 : index
    %c0_5 = arith.constant 0 : index
    %5 = vector.load %arg2[%c0_4, %c0_5] : memref<2x16xf32, #tpu.memory_space<vmem>>, vector<2x16xf32>
    %c0_6 = arith.constant 0 : index
    %c0_7 = arith.constant 0 : index
    %6 = vector.load %arg4[%c0_6, %c0_7] : memref<16x32xf32, #tpu.memory_space<vmem>>, vector<16x32xf32>
    %cst_8 = arith.constant dense<0.000000e+00> : vector<2x32xf32>
    %7 = tpu.matmul %5, %6, %cst_8 {dimension_numbers = #tpu.dot_dimension_numbers<[1], [0], [0], [1], [0, 0, 1, 1], [], []>} : vector<2x16xf32>, vector<16x32xf32>, vector<2x32xf32> -> vector<2x32xf32>
    %8 = vector.shape_cast %7 : vector<2x32xf32> to vector<2x1x32xf32>
    %9 = vector.broadcast %8 : vector<2x1x32xf32> to vector<2x8x32xf32>
    %10 = arith.addf %4, %9 : vector<2x8x32xf32>
    %11 = math.tanh %10 : vector<2x8x32xf32>
    %c0_9 = arith.constant 0 : index
    %c0_10 = arith.constant 0 : index
    %12 = vector.load %arg5[%c0_9, %c0_10] : memref<1x32xf32, #tpu.memory_space<vmem>>, vector<1x32xf32>
    %13 = vector.shape_cast %12 : vector<1x32xf32> to vector<1x1x32xf32>
    %14 = vector.broadcast %13 : vector<1x1x32xf32> to vector<2x8x32xf32>
    %15 = arith.mulf %11, %14 : vector<2x8x32xf32>
    %cst_11 = arith.constant dense<0.000000e+00> : vector<2x8xf32>
    %16 = vector.multi_reduction <add>, %15, %cst_11 [2] : vector<2x8x32xf32> to vector<2x8xf32>
    %cst_12 = arith.constant dense<0xFF800000> : vector<2xf32>
    %17 = vector.multi_reduction <maximumf>, %16, %cst_12 [1] : vector<2x8xf32> to vector<2xf32>
    %18 = vector.shape_cast %17 : vector<2xf32> to vector<2x1xf32>
    %19 = vector.broadcast %18 : vector<2x1xf32> to vector<2x8xf32>
    %20 = arith.subf %16, %19 : vector<2x8xf32>
    %21 = math.exp %20 : vector<2x8xf32>
    %cst_13 = arith.constant dense<0.000000e+00> : vector<2xf32>
    %22 = vector.multi_reduction <add>, %21, %cst_13 [1] : vector<2x8xf32> to vector<2xf32>
    %23 = vector.shape_cast %22 : vector<2xf32> to vector<2x1xf32>
    %24 = tpu.reciprocal %23 {approx = true} : vector<2x1xf32> -> vector<2x1xf32>
    %25 = arith.mulf %23, %24 : vector<2x1xf32>
    %cst_14 = arith.constant 2.000000e+00 : f32
    %26 = vector.broadcast %cst_14 : f32 to vector<2x1xf32>
    %27 = arith.subf %26, %25 : vector<2x1xf32>
    %28 = arith.mulf %24, %27 : vector<2x1xf32>
    %29 = vector.broadcast %28 : vector<2x1xf32> to vector<2x8xf32>
    %30 = arith.mulf %21, %29 : vector<2x8xf32>
    %c0_15 = arith.constant 0 : index
    %c0_16 = arith.constant 0 : index
    %31 = vector.load %arg6[%c0_15, %c0_16] : memref<2x8xf32, #tpu.memory_space<vmem>>, vector<2x8xf32>
    tpu.vector_store %arg6[%c0_15, %c0_16], %30 {strides = array<i32>} : memref<2x8xf32, #tpu.memory_space<vmem>>, vector<2x8xf32>,
    return
  }
  func.func @transform_0(%arg0: i32) -> (i32, i32, i32) {
    %c0_i32 = arith.constant 0 : i32
    %c0_i32_0 = arith.constant 0 : i32
    %c0_i32_1 = arith.constant 0 : i32
    return %arg0, %c0_i32, %c0_i32_0 : i32, i32, i32
  }
  func.func @transform_1(%arg0: i32) -> (i32, i32) {
    %c0_i32 = arith.constant 0 : i32
    %c0_i32_0 = arith.constant 0 : i32
    return %arg0, %c0_i32 : i32, i32
  }
  func.func @transform_2(%arg0: i32) -> (i32, i32) {
    %c0_i32 = arith.constant 0 : i32
    %c0_i32_0 = arith.constant 0 : i32
    %c0_i32_1 = arith.constant 0 : i32
    return %c0_i32, %c0_i32_0 : i32, i32
  }
  func.func @transform_3(%arg0: i32) -> (i32, i32) {
    %c0_i32 = arith.constant 0 : i32
    %c0_i32_0 = arith.constant 0 : i32
    %c0_i32_1 = arith.constant 0 : i32
    return %c0_i32, %c0_i32_0 : i32, i32
  }
  func.func @transform_4(%arg0: i32) -> (i32, i32) {
    %c0_i32 = arith.constant 0 : i32
    %c0_i32_0 = arith.constant 0 : i32
    %c0_i32_1 = arith.constant 0 : i32
    return %c0_i32, %c0_i32_0 : i32, i32
  }
  func.func @transform_5(%arg0: i32) -> (i32, i32) {
    %c0_i32 = arith.constant 0 : i32
    %c0_i32_0 = arith.constant 0 : i32
    return %arg0, %c0_i32 : i32, i32
  }
}

</mosaic_0001>

<bundles_post_ra>
// kernel: tpu_custom_call.1
= control target key start
LH: loop header
LB: loop body
LE: loop exit
PB: predicated region body
PF: predicated region fallthrough
CT: control target
= control target key end

     0   :  { %10 = vsyncpa [#allocation3], 0  ;;  %s680_s0 = inlined_call_operand.hbm [shape: f32[2,8,32], index: 0, kind: input, shape index: {}]   ;;  %s681_s1 = inlined_call_operand.vmem [shape: f32[2,16], index: 1, kind: input, shape index: {}]   ;;  %s682_s2 = inlined_call_operand.hbm [shape: f32[32,32], index: 2, kind: input, shape index: {}]   ;;  %s683_s3 = inlined_call_operand.hbm [shape: f32[16,32], index: 3, kind: input, shape index: {}]   ;;  %s684_s4 = inlined_call_operand.vmem [shape: f32[1,32], index: 4, kind: input, shape index: {}]   ;;  %s685_s5 = inlined_call_operand.hbm [shape: f32[2,8], index: 5, kind: output, shape index: {}]  }
   0x1   :  { %11 = vsyncpa [#allocation6], 0 }
   0x2   :  { %12 = vsyncpa [#allocation4], 0  ;;  %s547_s18 = smov [#allocation5]   ;;  %s548_s20 = smov [#allocation2]  }
   0x3   :  { %s32_s19 = sshll.u32 %s547_s18, 4  ;;  %s18_s21 = sshll.u32 %s548_s20, 4  ;;  %s33_s19 = int_to_ptr.vmem [resolvable:$true] %s32_s19  ;;  %s588_s21 = int_to_ptr.vmem [resolvable:$true] %s18_s21 }
   0x4   :  { %s453_s24 = scalar_lea.hbm %s682_s2, 512 }
   0x5   :  { %p454_p0 = scmp.ne.s32.totalorder %s682_s2, %s453_s24  ;;  %p457_p1 = scmp.lt.u32.totalorder %s453_s24, %s682_s2 }
   0x7   :  { %p459_p2 = pnand %p457_p1, %p454_p0 }
   0x9   :  { %462 = shalt.err (!%p459_p2)
}
   0xa   :  { %s463_s29 = scalar_lea.vmem %s33_s19, 512  ;;  %p468_p4 = scmp.lt.s32.totalorder %s33_s19, %s33_s19 }
   0xb   :  { %p464_p3 = scmp.ne.s32.totalorder %s33_s19, %s463_s29  ;;  %p469_p5 = scmp.lt.s32.totalorder %s463_s29, %s463_s29 }
   0xd   :  { %p470_p6 = por %p469_p5, %p468_p4 }
   0xf   :  { %p471_p7 = pnand %p470_p6, %p464_p3 }
  0x11   :  { %474 = shalt.err (!%p471_p7)
}
  0x12   :  { %s549_s30 = smov 128   ;;  %s550_s6 = smov 8  }
  0x13   :  { %38 = dma.hbm_to_vmem [thread:$0]  %s682_s2, 512, %s33_s19, [#allocation6], %s549_s30, %s549_s30, %s550_s6  }
  0x14   :  { %s475_s11 = scalar_lea.hbm %s680_s0, 256 }
  0x15   :  { %p476_p8 = scmp.ne.s32.totalorder %s680_s0, %s475_s11  ;;  %p479_p9 = scmp.lt.u32.totalorder %s475_s11, %s680_s0 }
  0x17   :  { %p481_p10 = pnand %p479_p9, %p476_p8 }
  0x19   :  { %484 = shalt.err (!%p481_p10)
}
  0x1a   :  { %s485_s16 = scalar_lea.vmem %s588_s21, 256  ;;  %p490_p12 = scmp.lt.s32.totalorder %s588_s21, %s588_s21 }
  0x1b   :  { %p486_p11 = scmp.ne.s32.totalorder %s588_s21, %s485_s16  ;;  %p491_p13 = scmp.lt.s32.totalorder %s485_s16, %s485_s16 }
  0x1d   :  { %p492_p0 = por %p491_p13, %p490_p12 }
  0x1f   :  { %p493_p1 = pnand %p492_p0, %p486_p11 }
  0x21   :  { %496 = shalt.err (!%p493_p1)
}
  0x22   :  { %24 = dma.hbm_to_vmem [thread:$0]  %s680_s0, 256, %s588_s21, [#allocation3], %s549_s30, %s549_s30, %s550_s6  }
  0x23   :  { %s551_s18 = smov [#allocation7]   ;;  %s497_s23 = scalar_lea.hbm %s683_s3, 256 }
  0x24   :  { %s44_s19 = sshll.u32 %s551_s18, 4  ;;  %p498_p2 = scmp.ne.s32.totalorder %s683_s3, %s497_s23  ;;  %s45_s19 = int_to_ptr.vmem [resolvable:$true] %s44_s19 }
  0x25   :  { %p501_p3 = scmp.lt.u32.totalorder %s497_s23, %s683_s3 }
  0x27   :  { %p503_p4 = pnand %p501_p3, %p498_p2 }
  0x29   :  { %506 = shalt.err (!%p503_p4)
}
  0x2a   :  { %s507_s28 = scalar_lea.vmem %s45_s19, 256  ;;  %p512_p6 = scmp.lt.s32.totalorder %s45_s19, %s45_s19 }
  0x2b   :  { %p508_p5 = scmp.ne.s32.totalorder %s45_s19, %s507_s28  ;;  %p513_p7 = scmp.lt.s32.totalorder %s507_s28, %s507_s28 }
  0x2d   :  { %p514_p8 = por %p513_p7, %p512_p6 }
  0x2f   :  { %p515_p9 = pnand %p514_p8, %p508_p5 }
  0x31   :  { %518 = shalt.err (!%p515_p9)
}
  0x32   :  { %50 = dma.hbm_to_vmem [thread:$0]  %s683_s3, 256, %s45_s19, [#allocation6], %s549_s30, %s549_s30, %s550_s6  }
  0x33   :  { %541 = dma.done.wait [#allocation3], 256  }
  0x34   :  { %542 = vsyncadd [#allocation3], 4294967040 }
  0x35   :  { %543 = dma.done.wait [#allocation6], 768  }
  0x36   :  { %544 = vsyncadd [#allocation6], 4294966528  ;;  %v552_v0 = vmov 0.0|0.0   ;;  %vm553_vm0 = vmmov 0   ;;  %v554_v1 = vmov 0.0   ;;  %v64_v2 = vld [vmem:[#allocation5] sm:$0xff]  ;;  %v231_v16 = vlaneseq }
  0x37   :  { %427 = vmatprep.subr.bf16.mxu1 %v552_v0  ;;  %416 = vmatprep.mubr.msk.f32.mxu1 %vm553_vm0, %v554_v1  ;;  %v65_v3 = vld [vmem:[#allocation5 + $0x8] sm:$0xff]  ;;  %v151_v4 = vld [vmem:[#allocation7] sm:$0xff]  ;;  %vm68_vm1 = vcmask 261120   ;;  %v66_v7 = vld [vmem:[#allocation5 + $0x10] sm:$0xff]  ;;  %vm153_vm2 = vcmask 130048   ;;  %vm291_vm3 = vcmask 1041409  }
  0x38   :  { %v419_v5 = vpack.c.bf16 %v65_v3, %v64_v2  ;;  %v152_v6 = vld [vmem:[#allocation7 + $0x8] sm:$0xff]  ;;  %v67_v9 = vld [vmem:[#allocation5 + $0x18] sm:$0xff]  ;;  %v62_v10 = vld [vmem:[#allocation2] sm:$0xff]  ;;  %v555_v14 = vmov 1966171168   ;;  %v645_v18 = vshrl.u32 %v231_v16, 7 }
  0x39   :  { %v428_v8 = vpack.c.bf16 %v152_v6, %v151_v4  ;;  %v423_v11 = vpack.c.bf16 %v67_v9, %v66_v7  ;;  %409 = vmatprep.mubr.msk.f32.mxu0 %vm68_vm1, %v62_v10  ;;  %v150_v12 = vld [vmem:[%s681_s1] sm:$0x3]  ;;  %v63_v13 = vld [vmem:[#allocation2 + $0x8] sm:$0xff]  ;;  %v229_v15 = vunpack.c.l.s4 %v555_v14  ;;  %v282_v40 = vand.u32 127, %v231_v16 }
  0x3a   :  { %420 = vmatprep.subr.bf16.mxu0 %v419_v5  ;;  %v649_v23 = vsub.s32 0, %v645_v18  ;;  %v391_v33 = vld [vmem:[%s684_s4] ss:$0 sm:$0xff]  ;;  %vm294_vm4 = vcmask 58368   ;;  %v556_v48 = vmov 0   ;;  %v305_v49 = vsub.s32 1, %v645_v18 }
  0x3b   :  { %429 = vmatpush3.bf16.msra.mxu1 %v428_v8  ;;  %422 = vmatpush3.bf16.msra.mxu0 %v419_v5  ;;  %v230_v17 = vunpack.c.0.s8 %v229_v15  ;;  %v285_v42 = vsub.s32 %v282_v40, %v645_v18  ;;  %s557_s4 = smov [#allocation8]  }
  0x3c   :  { %424 = vmatprep.subr.bf16.mxu0 %v423_v11  ;;  %442 = vset.pattern.permute.xlu0 %v556_v48  ;;  %s378_s6 = sshll.u32 %s557_s4, 4  ;;  %s379_s6 = int_to_ptr.vmem [resolvable:$true] %s378_s6 }
  0x3d   :  { %v233_v19 = vsub.s32 %v230_v17, %v645_v18  ;;  %441 = vset.pattern.permute.xlu1 %v556_v48  ;;  %s519_s7 = scalar_lea.vmem %s379_s6, 32  ;;  %p524_p11 = scmp.lt.s32.totalorder %s379_s6, %s379_s6 }
  0x3e   :  { %417 = vmatmul.mubr.msk.f32.vlgmr.msra.gmra.mrb[0].mxu1 %vm153_vm2, %v150_v12  ;;  %p520_p10 = scmp.ne.s32.totalorder %s379_s6, %s519_s7  ;;  %p525_p12 = scmp.lt.s32.totalorder %s519_s7, %s519_s7 }
  0x3f   :  { %426 = vmatpush3.bf16.msra.mxu0 %v423_v11 }
  0x40   :  { %p526_p13 = por %p525_p12, %p524_p11 }
  0x42   :  { %410 = vmatmul.mubr.msk.f32.vlgmr.msra.gmra.mrb[0].mxu0 %vm68_vm1, %v63_v13  ;;  %p527_p0 = pnand %p526_p13, %p520_p10 }
 0x111   :  { %v223_v20 = vpop.f32.mrb[0].mxu1 }
 0x112   :  { %v234_v21 = vrot.slane %v223_v20, %v233_v19  ;;  %v418_v22 = vpop.f32.mrb[1].mxu1 }
 0x114   :  { %v235_v24 = vcombine.high %v234_v21, %v234_v21  ;;  %v242_v25 = vrot.slane %v234_v21, %v233_v19 }
 0x115   :  { %v411_v26 = vpop.f32.mrb[0].mxu0 }
 0x116   :  { %v249_v27 = vrot.slane %v235_v24, %v233_v19  ;;  %v141_v28 = vpop.f32.mrb[1].mxu0  ;;  %v253_v29 = vrot.slane %v242_v25, %v649_v23 }
 0x118   :  { %v257_v30 = vrot.slane %v249_v27, %v649_v23  ;;  %v260_v31 = vadd.f32 %v253_v29, %v141_v28 }
 0x11a   :  { %v261_v32 = vadd.f32 %v411_v26, %v257_v30  ;;  %443 = vtanh.f32 %v260_v31 }
 0x11c   :  { %445 = vtanh.f32 %v261_v32 }
 0x124   :  { %v444_v34 = vpop.eup %443 }
 0x125   :  { %v271_v35 = vmul.f32 %v444_v34, %v391_v33 }
 0x126   :  { %v446_v36 = vpop.eup %445 }
 0x127   :  { %v273_v37 = vsel %vm68_vm1, %v271_v35, 0.0  ;;  %v272_v38 = vmul.f32 %v446_v36, %v391_v33 }
 0x128   :  { %274 = vadd.xlane.f32.xlu0 %v273_v37 }
 0x129   :  { %v276_v39 = vsel %vm68_vm1, %v272_v38, 0.0 }
 0x12c   :  { %277 = vadd.xlane.f32.xlu0 %v276_v39 }
 0x1b5   :  { %v275_v41 = vpop.xlane.xlu0 %274 }
 0x1b6   :  { %v286_v44 = vrot.slane %v275_v41, %v285_v42 }
 0x1b9   :  { %v278_v43 = vpop.xlane.xlu0 %277 }
 0x1ba   :  { %v290_v45 = vrot.slane %v278_v43, %v285_v42 }
 0x1bc   :  { %v292_v46 = vsel %vm291_vm3, %v290_v45, %v286_v44 }
 0x1bd   :  { %v295_v47 = vsel %vm294_vm4, %v292_v46, -inf }
 0x1be   :  { %296 = vmax.xlane.f32.xlu1 %v295_v47 }
 0x24b   :  { %v297_v50 = vpop.xlane.xlu1 %296 }
 0x24c   :  { %v302_v51 = vrot.slane %v297_v50, %v649_v23  ;;  %v306_v52 = vrot.slane %v297_v50, %v305_v49 }
 0x24e   :  { %v309_v53 = vsub.f32 %v275_v41, %v302_v51  ;;  %v310_v54 = vsub.f32 %v278_v43, %v306_v52 }
 0x250   :  { %v311_v55 = vmul.f32 1.442695, %v309_v53  ;;  %v313_v56 = vmul.f32 1.442695, %v310_v54 }
 0x252   :  { %447 = vpow2.f32 %v311_v55 }
 0x253   :  { %449 = vpow2.f32 %v313_v56 }
 0x25c   :  { %v448_v57 = vpop.eup %447 }
 0x25d   :  { %v450_v58 = vpop.eup %449  ;;  %318 = vperm.xlu1 %441, %v448_v57  }
 0x25e   :  { %321 = vperm.xlu0 %442, %v450_v58  }
 0x2dc   :  { %v319_v59 = vpop.permute.xlu1 %318 }
 0x2dd   :  { %v322_v60 = vpop.permute.xlu0 %321  ;;  %v326_v61 = vrot.slane %v319_v59, %v285_v42 }
 0x2de   :  { %v330_v62 = vrot.slane %v322_v60, %v285_v42 }
 0x2e0   :  { %v331_v63 = vsel %vm291_vm3, %v330_v62, %v326_v61 }
 0x2e1   :  { %v333_v0 = vsel %vm294_vm4, %v331_v63, 0.0 }
 0x2e2   :  { %334 = vadd.xlane.f32.xlu1 %v333_v0 }
 0x36f   :  { %v335_v1 = vpop.xlane.xlu1 %334 }
 0x370   :  { %451 = vrcp.f32 %v335_v1 }
 0x37a   :  { %v452_v2 = vpop.eup %451 }
 0x37b   :  { %v337_v3 = vmul.f32 %v452_v2, %v335_v1 }
 0x37d   :  { %v338_v4 = vsub.f32 2.0, %v337_v3 }
 0x37f   :  { %v339_v5 = vmul.f32 %v452_v2, %v338_v4 }
 0x381   :  { %v344_v6 = vrot.slane %v339_v5, %v649_v23  ;;  %v348_v7 = vrot.slane %v339_v5, %v305_v49 }
 0x383   :  { %v351_v8 = vmul.f32 %v448_v57, %v344_v6  ;;  %v352_v9 = vmul.f32 %v450_v58, %v348_v7 }
 0x385   :  { %356 = vperm.xlu0 %442, %v351_v8  }
 0x389   :  { %359 = vperm.xlu0 %442, %v352_v9  }
 0x404   :  { %v357_v10 = vpop.permute.xlu0 %356 }
 0x405   :  { %v364_v12 = vrot.slane %v357_v10, %v285_v42 }
 0x408   :  { %v360_v11 = vpop.permute.xlu0 %359 }
 0x409   :  { %v368_v13 = vrot.slane %v360_v11, %v285_v42 }
 0x40b   :  { %v369_v14 = vsel %vm291_vm3, %v368_v13, %v364_v12 }
 0x40c   :  { %371 = vst.msk [vmem:[#allocation8] sm:$0x3] %vm294_vm4, %v369_v14 }
 0x40d   :  { %530 = shalt.err (!%p527_p0)
}
 0x40e   :  { %s531_s10 = scalar_lea.hbm %s685_s5, 32 }
 0x40f   :  { %p532_p1 = scmp.ne.s32.totalorder %s685_s5, %s531_s10  ;;  %p535_p2 = scmp.lt.u32.totalorder %s531_s10, %s685_s5 }
 0x411   :  { %p537_p3 = pnand %p535_p2, %p532_p1 }
 0x413   :  { %540 = shalt.err (!%p537_p3)
}
 0x414   :  { %381 = dma.vmem_to_hbm [thread:$0]  %s379_s6, 32, %s685_s5, [#allocation4]  }
 0x415   :  { %545 = dma.done.wait [#allocation4], 32  }
 0x416   :  { %546 = vsyncadd [#allocation4], 4294967264 }
 0x417   :  { %385 = vsyncpa [#allocation3], 1 }
 0x418   :  { %386 = vsyncpa [#allocation6], 1 }
 0x419   :  { %387 = vsyncpa [#allocation4], 1 }

</bundles_post_ra>
